<compile_context>
chip_gen: v5e
topology: v5e:2x2
jax: 0.10.0
libtpu: 0.0.40
codegen_flags: <defaults>
</compile_context>

<pallas_src>
import functools

import jax
import jax.numpy as jnp
from jax import lax
from jax.experimental import pallas as pl
from jax.experimental.pallas import tpu as pltpu  # noqa: F401  (TPU backend)

BN_EPS = 1e-5
DPAD = 128  # lane-dense feature width


# ----------------------------- Pallas kernel ------------------------------- #

def _make_fused_mlp_kernel(hidden_count):
    """Build the fused kernel for a fixed number of hidden layers."""

    def kernel(x_ref, *refs):
        # refs = [w0, p0, w1, p1, ..., w_out, p_out, o_ref]
        #   hidden p tile rows: 0 = gamma, 1 = beta   (no hidden bias: see header)
        #   out    p tile rows: 0 = bias
        o_ref = refs[-1]
        params = refs[:-1]

        h = x_ref[...]  # [B, din] f32; whole batch resident (BN needs it)
        inv_b = 1.0 / h.shape[0]

        for i in range(hidden_count):
            w_ref = params[2 * i]        # [din|DPAD, DPAD] bf16
            p_ref = params[2 * i + 1]    # [8, DPAD] f32
            gamma = p_ref[0:1, :]
            beta = p_ref[1:2, :]

            # Linear, no bias (cancelled exactly by BN mean subtraction).
            # bf16 operands, f32 MXU accumulation.
            h = jnp.dot(h.astype(jnp.bfloat16), w_ref[...],
                        preferred_element_type=jnp.float32)       # [B, DPAD] f32

            # BatchNorm1d (training mode) stats in one sweep over the tile.
            mean = jnp.sum(h, axis=0, keepdims=True) * inv_b       # [1, DPAD]
            ex2 = jnp.sum(h * h, axis=0, keepdims=True) * inv_b    # [1, DPAD]
            var = jnp.maximum(ex2 - mean * mean, 0.0)              # guard tiny <0
            scale = gamma * lax.rsqrt(var + BN_EPS)                # 0 on padded cols
            shift = beta - mean * scale

            # Fused normalize + affine + ReLU (f32 epilogue on all generations).
            h = jnp.maximum(h * scale + shift, 0.0)

        # Final Linear (bias kept here).
        w_ref = params[2 * hidden_count]
        p_ref = params[2 * hidden_count + 1]
        b = p_ref[0:1, :]
        o_ref[...] = (
            jnp.dot(h.astype(jnp.bfloat16), w_ref[...],
                    preferred_element_type=jnp.float32) + b
        ).astype(o_ref.dtype)

    return kernel


def _full_spec(shape):
    # Whole-array block, single grid point.
    return pl.BlockSpec(shape, lambda: tuple(0 for _ in shape))


# ------------------------------ Parameter init ----------------------------- #

def init_mlp_params(key, input_size, hidden_size, num_classes, hidden_count):
    """Unpadded parameters matching the torch module's __init__ semantics."""
    n_neurons = [input_size] + [hidden_size // (2 ** i) for i in range(hidden_count)]
    hidden = []
    for i in range(hidden_count):
        din, dout = n_neurons[i], n_neurons[i + 1]
        key, kb = jax.random.split(key)
        w_t = jnp.ones((din, dout), jnp.float32)          # initializer = ones_
        bound = 1.0 / (din ** 0.5)                        # default Linear bias init
        b = jax.random.uniform(kb, (dout,), jnp.float32, -bound, bound)
        gamma = jnp.ones((dout,), jnp.float32)            # fresh BatchNorm1d affine
        beta = jnp.zeros((dout,), jnp.float32)
        hidden.append((w_t, b, gamma, beta))
    din, dout = n_neurons[-1], num_classes
    key, kb = jax.random.split(key)
    w_out = jnp.ones((din, dout), jnp.float32)
    bound = 1.0 / (din ** 0.5)
    b_out = jax.random.uniform(kb, (dout,), jnp.float32, -bound, bound)
    return {"hidden": hidden, "out": (w_out, b_out)}


def _pad_weight(w, kpad, npad):
    """Zero-pad weight to [kpad, npad] and cast to bf16 (exact for ones init)."""
    din, dout = w.shape
    return (jnp.zeros((kpad, npad), jnp.float32)
            .at[:din, :dout].set(w)
            .astype(jnp.bfloat16))


def _pack_rows(vecs, dpad=DPAD):
    """Pack a few [D] vectors into one [8, dpad] f32 tile (one vreg row each)."""
    p = jnp.zeros((8, dpad), jnp.float32)
    for r, v in enumerate(vecs):
        p = p.at[r, : v.shape[0]].set(v)
    return p


def pad_params(params, dpad=DPAD):
    """Flatten + lane-pad params once, ready to feed the fused kernel.

    First layer's weight keeps its real contraction dim so x needs no padding;
    subsequent weights use [dpad, dpad].  Padded gamma columns stay 0 (required).
    """
    flat = []
    first = True
    for (w_t, _b, gamma, beta) in params["hidden"]:
        kpad = w_t.shape[0] if first else dpad
        flat.append(_pad_weight(w_t, kpad, dpad))
        flat.append(_pack_rows([gamma, beta], dpad))   # hidden bias dropped (BN cancels it)
        first = False
    w_out, b_out = params["out"]
    kpad = w_out.shape[0] if first else dpad
    flat.append(_pad_weight(w_out, kpad, dpad))
    flat.append(_pack_rows([b_out], dpad))
    return tuple(flat)


# --------------------------------- Forward --------------------------------- #

@functools.partial(jax.jit, static_argnames=("hidden_count", "num_classes", "dpad"))
def mlp_forward(x, flat_params, *, hidden_count, num_classes, dpad=DPAD):
    """Single fused pallas_call for the whole MLP.  x: [B, input_size] f32."""
    B = x.shape[0]
    in_specs = [_full_spec(x.shape)] + [_full_spec(p.shape) for p in flat_params]

    out_pad = pl.pallas_call(
        _make_fused_mlp_kernel(hidden_count),
        out_shape=jax.ShapeDtypeStruct((B, dpad), jnp.float32),
        in_specs=in_specs,
        out_specs=_full_spec((B, dpad)),
        # Footprint: ~90 KiB of tiles (bf16 weights) double-buffered -> fits any
        # generation's default scoped VMEM (incl. v7x) with huge headroom.
    )(x, *flat_params)

    return out_pad[:, :num_classes]


def mlp_forward_ref(params, x):
    """Pure-JAX f32 reference of the torch forward (incl. the hidden bias,
    which the kernel drops because BN cancels it exactly)."""
    h = x
    for (w_t, b, gamma, beta) in params["hidden"]:
        h = h @ w_t + b[None, :]
        mean = jnp.mean(h, axis=0, keepdims=True)
        var = jnp.mean(jnp.square(h - mean), axis=0, keepdims=True)
        h = (h - mean) * lax.rsqrt(var + BN_EPS) * gamma[None, :] + beta[None, :]
        h = jnp.maximum(h, 0.0)
    w_out, b_out = params["out"]
    return h @ w_out + b_out[None, :]


# ----------------------------------- Main ----------------------------------- #

if __name__ == "__main__":
    input_size = 32
    hidden_size = 32
    num_classes = 10
    hidden_count = 2       # n_neurons = [32, 32, 16]
    batch = 8              # BatchNorm needs the full batch in one block

    key = jax.random.PRNGKey(0)
    key_x, key_p = jax.random.split(key)

    params = init_mlp_params(key_p, input_size, hidden_size, num_classes, hidden_count)
    flat_params = pad_params(params)
    x = jax.random.normal(key_x, (batch, input_size), jnp.float32)

    out = mlp_forward(
        x, flat_params,
        hidden_count=hidden_count, num_classes=num_classes,
    )
    out = jax.block_until_ready(out)

    ref = mlp_forward_ref(params, x)
    assert out.shape == (batch, num_classes), out.shape
    # bf16 matmul operands (~3 decimal digits) -> tolerance relaxed vs pure f32.
    assert jnp.allclose(out, ref, rtol=5e-2, atol=1e-1), (
        "mismatch vs reference; max abs err = "
        + str(float(jnp.max(jnp.abs(out - ref)))))

    print("KERNEL_OK")
</pallas_src>

<mosaic_0001>
module attributes {stable_mosaic.version = 11 : i64} {
  func.func @kernel(%arg0: memref<8x32xf32, #tpu.memory_space<vmem>>, %arg1: memref<32x128xbf16, #tpu.memory_space<vmem>>, %arg2: memref<8x128xf32, #tpu.memory_space<vmem>>, %arg3: memref<128x128xbf16, #tpu.memory_space<vmem>>, %arg4: memref<8x128xf32, #tpu.memory_space<vmem>>, %arg5: memref<128x128xbf16, #tpu.memory_space<vmem>>, %arg6: memref<8x128xf32, #tpu.memory_space<vmem>>, %arg7: memref<8x128xf32, #tpu.memory_space<vmem>>) attributes {dimension_semantics = [], scalar_prefetch = 0 : i64, scratch_operands = 0 : i64, tpu.core_type = #tpu.core_type<tc>} {
    %c0 = arith.constant 0 : index
    %c0_0 = arith.constant 0 : index
    %0 = vector.load %arg0[%c0, %c0_0] : memref<8x32xf32, #tpu.memory_space<vmem>>, vector<8x32xf32>
    %c0_1 = arith.constant 0 : index
    %c0_2 = arith.constant 0 : index
    %1 = vector.load %arg2[%c0_1, %c0_2] : memref<8x128xf32, #tpu.memory_space<vmem>>, vector<1x128xf32>
    %c1 = arith.constant 1 : index
    %c0_3 = arith.constant 0 : index
    %2 = vector.load %arg2[%c1, %c0_3] : memref<8x128xf32, #tpu.memory_space<vmem>>, vector<1x128xf32>
    %3 = arith.truncf %0 : vector<8x32xf32> to vector<8x32xbf16>
    %c0_4 = arith.constant 0 : index
    %c0_5 = arith.constant 0 : index
    %4 = vector.load %arg1[%c0_4, %c0_5] : memref<32x128xbf16, #tpu.memory_space<vmem>>, vector<32x128xbf16>
    %cst = arith.constant dense<0.000000e+00> : vector<8x128xf32>
    %5 = tpu.matmul %3, %4, %cst {dimension_numbers = #tpu.dot_dimension_numbers<[1], [0], [0], [1], [0, 0, 1, 1], [], []>} : vector<8x32xbf16>, vector<32x128xbf16>, vector<8x128xf32> -> vector<8x128xf32>
    %cst_6 = arith.constant dense<0.000000e+00> : vector<128xf32>
    %6 = vector.multi_reduction <add>, %5, %cst_6 [0] : vector<8x128xf32> to vector<128xf32>
    %7 = vector.shape_cast %6 : vector<128xf32> to vector<1x128xf32>
    %cst_7 = arith.constant 1.250000e-01 : f32
    %8 = vector.broadcast %cst_7 : f32 to vector<1x128xf32>
    %9 = arith.mulf %7, %8 : vector<1x128xf32>
    %10 = arith.mulf %5, %5 : vector<8x128xf32>
    %cst_8 = arith.constant dense<0.000000e+00> : vector<128xf32>
    %11 = vector.multi_reduction <add>, %10, %cst_8 [0] : vector<8x128xf32> to vector<128xf32>
    %12 = vector.shape_cast %11 : vector<128xf32> to vector<1x128xf32>
    %cst_9 = arith.constant 1.250000e-01 : f32
    %13 = vector.broadcast %cst_9 : f32 to vector<1x128xf32>
    %14 = arith.mulf %12, %13 : vector<1x128xf32>
    %15 = arith.mulf %9, %9 : vector<1x128xf32>
    %16 = arith.subf %14, %15 : vector<1x128xf32>
    %cst_10 = arith.constant 0.000000e+00 : f32
    %17 = vector.broadcast %cst_10 : f32 to vector<1x128xf32>
    %18 = arith.maximumf %16, %17 : vector<1x128xf32>
    %cst_11 = arith.constant 9.99999974E-6 : f32
    %19 = vector.broadcast %cst_11 : f32 to vector<1x128xf32>
    %20 = arith.addf %18, %19 : vector<1x128xf32>
    %21 = math.rsqrt %20 : vector<1x128xf32>
    %22 = arith.mulf %1, %21 : vector<1x128xf32>
    %23 = arith.mulf %9, %22 : vector<1x128xf32>
    %24 = arith.subf %2, %23 : vector<1x128xf32>
    %25 = vector.broadcast %22 : vector<1x128xf32> to vector<8x128xf32>
    %26 = arith.mulf %5, %25 : vector<8x128xf32>
    %27 = vector.broadcast %24 : vector<1x128xf32> to vector<8x128xf32>
    %28 = arith.addf %26, %27 : vector<8x128xf32>
    %cst_12 = arith.constant 0.000000e+00 : f32
    %29 = vector.broadcast %cst_12 : f32 to vector<8x128xf32>
    %30 = arith.maximumf %28, %29 : vector<8x128xf32>
    %c0_13 = arith.constant 0 : index
    %c0_14 = arith.constant 0 : index
    %31 = vector.load %arg4[%c0_13, %c0_14] : memref<8x128xf32, #tpu.memory_space<vmem>>, vector<1x128xf32>
    %c1_15 = arith.constant 1 : index
    %c0_16 = arith.constant 0 : index
    %32 = vector.load %arg4[%c1_15, %c0_16] : memref<8x128xf32, #tpu.memory_space<vmem>>, vector<1x128xf32>
    %33 = arith.truncf %30 : vector<8x128xf32> to vector<8x128xbf16>
    %c0_17 = arith.constant 0 : index
    %c0_18 = arith.constant 0 : index
    %34 = vector.load %arg3[%c0_17, %c0_18] : memref<128x128xbf16, #tpu.memory_space<vmem>>, vector<128x128xbf16>
    %cst_19 = arith.constant dense<0.000000e+00> : vector<8x128xf32>
    %35 = tpu.matmul %33, %34, %cst_19 {dimension_numbers = #tpu.dot_dimension_numbers<[1], [0], [0], [1], [0, 0, 1, 1], [], []>} : vector<8x128xbf16>, vector<128x128xbf16>, vector<8x128xf32> -> vector<8x128xf32>
    %cst_20 = arith.constant dense<0.000000e+00> : vector<128xf32>
    %36 = vector.multi_reduction <add>, %35, %cst_20 [0] : vector<8x128xf32> to vector<128xf32>
    %37 = vector.shape_cast %36 : vector<128xf32> to vector<1x128xf32>
    %cst_21 = arith.constant 1.250000e-01 : f32
    %38 = vector.broadcast %cst_21 : f32 to vector<1x128xf32>
    %39 = arith.mulf %37, %38 : vector<1x128xf32>
    %40 = arith.mulf %35, %35 : vector<8x128xf32>
    %cst_22 = arith.constant dense<0.000000e+00> : vector<128xf32>
    %41 = vector.multi_reduction <add>, %40, %cst_22 [0] : vector<8x128xf32> to vector<128xf32>
    %42 = vector.shape_cast %41 : vector<128xf32> to vector<1x128xf32>
    %cst_23 = arith.constant 1.250000e-01 : f32
    %43 = vector.broadcast %cst_23 : f32 to vector<1x128xf32>
    %44 = arith.mulf %42, %43 : vector<1x128xf32>
    %45 = arith.mulf %39, %39 : vector<1x128xf32>
    %46 = arith.subf %44, %45 : vector<1x128xf32>
    %cst_24 = arith.constant 0.000000e+00 : f32
    %47 = vector.broadcast %cst_24 : f32 to vector<1x128xf32>
    %48 = arith.maximumf %46, %47 : vector<1x128xf32>
    %cst_25 = arith.constant 9.99999974E-6 : f32
    %49 = vector.broadcast %cst_25 : f32 to vector<1x128xf32>
    %50 = arith.addf %48, %49 : vector<1x128xf32>
    %51 = math.rsqrt %50 : vector<1x128xf32>
    %52 = arith.mulf %31, %51 : vector<1x128xf32>
    %53 = arith.mulf %39, %52 : vector<1x128xf32>
    %54 = arith.subf %32, %53 : vector<1x128xf32>
    %55 = vector.broadcast %52 : vector<1x128xf32> to vector<8x128xf32>
    %56 = arith.mulf %35, %55 : vector<8x128xf32>
    %57 = vector.broadcast %54 : vector<1x128xf32> to vector<8x128xf32>
    %58 = arith.addf %56, %57 : vector<8x128xf32>
    %cst_26 = arith.constant 0.000000e+00 : f32
    %59 = vector.broadcast %cst_26 : f32 to vector<8x128xf32>
    %60 = arith.maximumf %58, %59 : vector<8x128xf32>
    %c0_27 = arith.constant 0 : index
    %c0_28 = arith.constant 0 : index
    %61 = vector.load %arg6[%c0_27, %c0_28] : memref<8x128xf32, #tpu.memory_space<vmem>>, vector<1x128xf32>
    %62 = arith.truncf %60 : vector<8x128xf32> to vector<8x128xbf16>
    %c0_29 = arith.constant 0 : index
    %c0_30 = arith.constant 0 : index
    %63 = vector.load %arg5[%c0_29, %c0_30] : memref<128x128xbf16, #tpu.memory_space<vmem>>, vector<128x128xbf16>
    %cst_31 = arith.constant dense<0.000000e+00> : vector<8x128xf32>
    %64 = tpu.matmul %62, %63, %cst_31 {dimension_numbers = #tpu.dot_dimension_numbers<[1], [0], [0], [1], [0, 0, 1, 1], [], []>} : vector<8x128xbf16>, vector<128x128xbf16>, vector<8x128xf32> -> vector<8x128xf32>
    %65 = vector.broadcast %61 : vector<1x128xf32> to vector<8x128xf32>
    %66 = arith.addf %64, %65 : vector<8x128xf32>
    %c0_32 = arith.constant 0 : index
    %c0_33 = arith.constant 0 : index
    %67 = vector.load %arg7[%c0_32, %c0_33] : memref<8x128xf32, #tpu.memory_space<vmem>>, vector<8x128xf32>
    tpu.vector_store %arg7[%c0_32, %c0_33], %66 {strides = array<i32>} : memref<8x128xf32, #tpu.memory_space<vmem>>, vector<8x128xf32>,
    return
  }
}

</mosaic_0001>

<bundles_post_ra>
// kernel: mlp_forward.1
= control target key start
LH: loop header
LB: loop body
LE: loop exit
PB: predicated region body
PF: predicated region fallthrough
CT: control target
= control target key end

     0   :  { %12 = vsyncpa [#allocation3], 0  ;;  %s803_s0 = inlined_call_operand.hbm [shape: f32[8,32], index: 0, kind: input, shape index: {}]   ;;  %s804_s1 = inlined_call_operand.hbm [shape: bf16[32,128], index: 1, kind: input, shape index: {}]   ;;  %s805_s2 = inlined_call_operand.hbm [shape: f32[8,128], index: 2, kind: input, shape index: {}]   ;;  %s806_s3 = inlined_call_operand.hbm [shape: bf16[128,128], index: 3, kind: input, shape index: {}]   ;;  %s807_s4 = inlined_call_operand.hbm [shape: f32[8,128], index: 4, kind: input, shape index: {}]   ;;  %s808_s5 = inlined_call_operand.hbm [shape: bf16[128,128], index: 5, kind: input, shape index: {}]   ;;  %s809_s6 = inlined_call_operand.hbm [shape: f32[8,128], index: 6, kind: input, shape index: {}]   ;;  %s810_s7 = inlined_call_operand.hbm [shape: f32[8,128], index: 7, kind: output, shape index: {}]  }
   0x1   :  { %13 = vsyncpa [#allocation6], 0 }
   0x2   :  { %14 = vsyncpa [#allocation9], 0 }
   0x3   :  { %15 = vsyncpa [#allocation12], 0  ;;  %s32_s26 = sshll.u32 %s804_s1, 4  ;;  %s33_s26 = int_to_ptr.hbm [resolvable:$true] %s32_s26 }
   0x4   :  { %16 = vsyncpa [#allocation4], 0  ;;  %s729_s27 = smov [#allocation5]   ;;  %s56_s8 = sshll.u32 %s806_s3, 4  ;;  %s57_s8 = int_to_ptr.hbm [resolvable:$true] %s56_s8 }
   0x5   :  { %s34_s28 = sshll.u32 %s729_s27, 4  ;;  %s730_s9 = smov 64   ;;  %s35_s28 = int_to_ptr.vmem [resolvable:$true] %s34_s28 }
   0x6   :  { %s731_s10 = smov 4   ;;  %s732_s11 = smov [#allocation8]  }
   0x7   :  { %40 = dma.hbm_to_vmem [thread:$0]  %s33_s26, 256, %s35_s28, [#allocation6], %s730_s9, %s730_s9, %s731_s10  }
   0x8   :  { %s58_s12 = sshll.u32 %s732_s11, 4  ;;  %s80_s15 = sshll.u32 %s808_s5, 4  ;;  %s59_s12 = int_to_ptr.vmem [resolvable:$true] %s58_s12  ;;  %s81_s15 = int_to_ptr.hbm [resolvable:$true] %s80_s15 }
   0x9   :  { %64 = dma.hbm_to_vmem [thread:$0]  %s57_s8, 1024, %s59_s12, [#allocation9], %s730_s9, %s730_s9, %s731_s10  }
   0xa   :  { %s22_s17 = sshll.u32 %s803_s0, 4  ;;  %s733_s18 = smov [#allocation11]   ;;  %s23_s17 = int_to_ptr.hbm [resolvable:$true] %s22_s17 }
   0xb   :  { %s82_s19 = sshll.u32 %s733_s18, 4  ;;  %s734_s3 = smov [#allocation2]   ;;  %s83_s19 = int_to_ptr.vmem [resolvable:$true] %s82_s19 }
   0xc   :  { %88 = dma.hbm_to_vmem [thread:$0]  %s81_s15, 1024, %s83_s19, [#allocation12], %s730_s9, %s730_s9, %s731_s10  }
   0xd   :  { %s24_s20 = sshll.u32 %s734_s3, 4  ;;  %s46_s23 = sshll.u32 %s805_s2, 4  ;;  %s25_s20 = int_to_ptr.vmem [resolvable:$true] %s24_s20  ;;  %s47_s23 = int_to_ptr.hbm [resolvable:$true] %s46_s23 }
   0xe   :  { %27 = dma.hbm_to_vmem [thread:$0]  %s23_s17, 128, %s25_s20, [#allocation3]  }
   0xf   :  { %s70_s25 = sshll.u32 %s807_s4, 4  ;;  %s735_s26 = smov [#allocation7]   ;;  %s71_s25 = int_to_ptr.hbm [resolvable:$true] %s70_s25 }
  0x10   :  { %s48_s0 = sshll.u32 %s735_s26, 4  ;;  %s736_s27 = smov [#allocation10]   ;;  %s49_s0 = int_to_ptr.vmem [resolvable:$true] %s48_s0 }
  0x11   :  { %51 = dma.hbm_to_vmem [thread:$0]  %s47_s23, 128, %s49_s0, [#allocation6]  }
  0x12   :  { %s72_s28 = sshll.u32 %s736_s27, 4  ;;  %s94_s8 = sshll.u32 %s809_s6, 4  ;;  %s73_s28 = int_to_ptr.vmem [resolvable:$true] %s72_s28  ;;  %s95_s8 = int_to_ptr.hbm [resolvable:$true] %s94_s8 }
  0x13   :  { %75 = dma.hbm_to_vmem [thread:$0]  %s71_s25, 128, %s73_s28, [#allocation9]  }
  0x14   :  { %s737_s2 = smov [#allocation13]  }
  0x15   :  { %s96_s9 = sshll.u32 %s737_s2, 4  ;;  %s97_s9 = int_to_ptr.vmem [resolvable:$true] %s96_s9 }
  0x16   :  { %99 = dma.hbm_to_vmem [thread:$0]  %s95_s8, 128, %s97_s9, [#allocation12]  }
  0x17   :  { %719 = dma.done.wait [#allocation3], 128  }
  0x18   :  { %720 = vsyncadd [#allocation3], 4294967168 }
  0x19   :  { %721 = dma.done.wait [#allocation6], 384  }
  0x1a   :  { %722 = vsyncadd [#allocation6], 4294966912 }
  0x1b   :  { %723 = dma.done.wait [#allocation9], 1152  }
  0x1c   :  { %724 = vsyncadd [#allocation9], 4294966144 }
  0x1d   :  { %725 = dma.done.wait [#allocation12], 1152  }
  0x1e   :  { %726 = vsyncadd [#allocation12], 4294966144  ;;  %v495_v0 = vld [vmem:[#allocation5 + $0x8] sm:$0xff]  ;;  %v494_v1 = vld [vmem:[#allocation5] sm:$0xff]  ;;  %vm149_vm0 = vcmask 261120   ;;  %s738_s4 = smov [#allocation14]  }
  0x1f   :  { %159 = vmatpush.bf16.msra.mxu0 %v495_v0  ;;  %v129_v2 = vld [vmem:[#allocation2] sm:$0xff]  ;;  %v503_v4 = vld [vmem:[#allocation8 + $0x38] sm:$0xff]  ;;  %v502_v5 = vld [vmem:[#allocation8 + $0x30] sm:$0xff]  ;;  %s406_s6 = sshll.u32 %s738_s4, 4  ;;  %s408_s12 = sshll.u32 %s810_s7, 4  ;;  %s407_s6 = int_to_ptr.vmem [resolvable:$true] %s406_s6  ;;  %s409_s12 = int_to_ptr.hbm [resolvable:$true] %s408_s12 }
  0x20   :  { %v132_v3 = vpack.c.bf16 %v129_v2, %v129_v2  ;;  %270 = vmatpush.bf16.msra.mxu1 %v503_v4  ;;  %v501_v6 = vld [vmem:[#allocation8 + $0x28] sm:$0xff]  ;;  %v500_v7 = vld [vmem:[#allocation8 + $0x20] sm:$0xff]  ;;  %v499_v8 = vld [vmem:[#allocation8 + $0x18] sm:$0xff] }
  0x21   :  { %v498_v12 = vld [vmem:[#allocation8 + $0x10] sm:$0xff]  ;;  %v497_v17 = vld [vmem:[#allocation8 + $0x8] sm:$0xff]  ;;  %v496_v23 = vld [vmem:[#allocation8] sm:$0xff] }
  0x22   :  { %v130_v38 = vld [vmem:[#allocation7] sm:$0x1]  ;;  %v131_v42 = vld [vmem:[#allocation7 + $0x1] sm:$0x1]  ;;  %v511_v51 = vld [vmem:[#allocation11 + $0x38] sm:$0xff] }
  0x23   :  { %160 = vmatpush.bf16.msra.mxu0 %v494_v1  ;;  %387 = vmatpush.bf16.msra.mxu2 %v511_v51  ;;  %v510_v52 = vld [vmem:[#allocation11 + $0x30] sm:$0xff]  ;;  %v509_v53 = vld [vmem:[#allocation11 + $0x28] sm:$0xff]  ;;  %v508_v54 = vld [vmem:[#allocation11 + $0x20] sm:$0xff] }
  0x24   :  { %271 = vmatpush.bf16.msra.mxu1 %v502_v5  ;;  %v507_v55 = vld [vmem:[#allocation11 + $0x18] sm:$0xff]  ;;  %v506_v59 = vld [vmem:[#allocation11 + $0x10] sm:$0xff]  ;;  %v505_v0 = vld [vmem:[#allocation11 + $0x8] sm:$0xff] }
  0x26   :  { %429 = vmatmul.msk.bf16.vlgmr.msra.gmra.mxu0 %vm149_vm0, %v132_v3 }
  0x27   :  { %388 = vmatpush.bf16.msra.mxu2 %v510_v52 }
  0x28   :  { %272 = vmatpush.bf16.msra.mxu1 %v501_v6  ;;  %v504_v6 = vld [vmem:[#allocation11] sm:$0xff] }
  0x2b   :  { %389 = vmatpush.bf16.msra.mxu2 %v509_v53 }
  0x2c   :  { %273 = vmatpush.bf16.msra.mxu1 %v500_v7 }
  0x2f   :  { %390 = vmatpush.bf16.msra.mxu2 %v508_v54 }
  0x30   :  { %274 = vmatpush.bf16.msra.mxu1 %v499_v8 }
  0x33   :  { %391 = vmatpush.bf16.msra.mxu2 %v507_v55 }
  0x34   :  { %275 = vmatpush.bf16.msra.mxu1 %v498_v12 }
  0x37   :  { %392 = vmatpush.bf16.msra.mxu2 %v506_v59 }
  0x38   :  { %276 = vmatpush.bf16.msra.mxu1 %v497_v17 }
  0x3b   :  { %393 = vmatpush.bf16.msra.mxu2 %v505_v0 }
  0x3c   :  { %277 = vmatpush.bf16.msra.mxu1 %v496_v23 }
  0x3f   :  { %394 = vmatpush.bf16.msra.mxu2 %v504_v6 }
  0xa3   :  { %v162_v9 = vpop.f32.mrf.mxu0 }
  0xa4   :  { %v166_v10 = vrot.slane %v162_v9, 4  ;;  %v173_v11 = vmul.f32 %v162_v9, %v162_v9 }
  0xa6   :  { %v167_v13 = vadd.f32 %v166_v10, %v162_v9  ;;  %v174_v14 = vrot.slane %v173_v11, 4 }
  0xa8   :  { %v168_v15 = vrot.slane %v167_v13, 2  ;;  %v175_v16 = vadd.f32 %v174_v14, %v173_v11 }
  0xaa   :  { %v169_v18 = vadd.f32 %v168_v15, %v167_v13  ;;  %v176_v19 = vrot.slane %v175_v16, 2 }
  0xab   :  { %v164_v20 = vpop.f32.mrf.mxu0 }
  0xac   :  { %v170_v21 = vrot.slane %v169_v18, 1  ;;  %v177_v22 = vadd.f32 %v176_v19, %v175_v16 }
  0xae   :  { %v178_v24 = vrot.slane %v177_v22, 1  ;;  %v171_v25 = vadd.f32 %v170_v21, %v169_v18  ;;  %v203_v21 = vld [vmem:[#allocation10] sm:$0x1] }
  0xb0   :  { %v179_v26 = vadd.f32 %v178_v24, %v177_v22  ;;  %v172_v27 = vmul.f32 0.125, %v171_v25  ;;  %v204_v25 = vld [vmem:[#allocation10 + $0x1] sm:$0x1] }
  0xb2   :  { %v180_v28 = vmul.f32 0.125, %v179_v26  ;;  %v181_v29 = vmul.f32 %v172_v27, %v172_v27 }
  0xb4   :  { %v182_v30 = vsub.f32 %v180_v28, %v181_v29 }
  0xb6   :  { %v183_v31 = vmax.f32 %v182_v30, 0.0 }
  0xb8   :  { %v184_v32 = vadd.f32 1e-05, %v183_v31 }
  0xba   :  { %523 = vrsqrt.f32 %v184_v32  ;;  %vm191_vm2 = vweird.f32 %v184_v32 }
  0xc0   :  { %v524_v33 = vpop.eup %523 }
  0xc1   :  { %v186_v34 = vmul.f32 %v524_v33, %v184_v32  ;;  %vm192_vm1 = vweird.f32 %v524_v33 }
  0xc2   :  { %vm193_vm3 = vmor %vm191_vm2, %vm192_vm1 }
  0xc3   :  { %v187_v35 = vmul.f32 %v524_v33, %v186_v34  ;;  %v522_v34 = vld [vmem:[#allocation13] ss:$0 sm:$0xff] }
  0xc5   :  { %v188_v36 = vmul.f32 0.5, %v187_v35 }
  0xc7   :  { %v189_v37 = vsub.f32 1.5, %v188_v36 }
  0xc9   :  { %v190_v39 = vmul.f32 %v524_v33, %v189_v37 }
  0xcb   :  { %v194_v40 = vsel %vm193_vm3, %v524_v33, %v190_v39 }
  0xcc   :  { %v195_v41 = vmul.f32 %v194_v40, %v130_v38 }
  0xce   :  { %v196_v43 = vmul.f32 %v195_v41, %v172_v27  ;;  %v198_v44 = vperm.slane %v195_v41, 0 }
  0xd0   :  { %v197_v45 = vsub.f32 %v131_v42, %v196_v43  ;;  %v199_v46 = vmul.f32 %v198_v44, %v162_v9 }
  0xd2   :  { %v200_v47 = vperm.slane %v197_v45, 0 }
  0xd4   :  { %v201_v48 = vadd.f32 %v200_v47, %v199_v46 }
  0xd6   :  { %v202_v49 = vmax.f32 %v201_v48, 0.0 }
  0xd8   :  { %v205_v50 = vpack.c.bf16 %v202_v49, %v202_v49 }
  0xda   :  { %278 = vmatmul.bf16.vlgmr.msra.gmra.mxu1 %v205_v50 }
 0x157   :  { %v279_v56 = vpop.f32.mrf.mxu1 }
 0x158   :  { %v283_v57 = vrot.slane %v279_v56, 4  ;;  %v290_v58 = vmul.f32 %v279_v56, %v279_v56 }
 0x15a   :  { %v284_v60 = vadd.f32 %v283_v57, %v279_v56  ;;  %v291_v61 = vrot.slane %v290_v58, 4 }
 0x15c   :  { %v285_v62 = vrot.slane %v284_v60, 2  ;;  %v292_v63 = vadd.f32 %v291_v61, %v290_v58 }
 0x15e   :  { %v286_v1 = vadd.f32 %v285_v62, %v284_v60  ;;  %v293_v2 = vrot.slane %v292_v63, 2 }
 0x15f   :  { %v281_v3 = vpop.f32.mrf.mxu1 }
 0x160   :  { %v287_v4 = vrot.slane %v286_v1, 1  ;;  %v294_v5 = vadd.f32 %v293_v2, %v292_v63 }
 0x162   :  { %v295_v7 = vrot.slane %v294_v5, 1  ;;  %v288_v8 = vadd.f32 %v287_v4, %v286_v1 }
 0x164   :  { %v296_v9 = vadd.f32 %v295_v7, %v294_v5  ;;  %v289_v10 = vmul.f32 0.125, %v288_v8 }
 0x166   :  { %v297_v11 = vmul.f32 0.125, %v296_v9  ;;  %v298_v12 = vmul.f32 %v289_v10, %v289_v10 }
 0x168   :  { %v299_v13 = vsub.f32 %v297_v11, %v298_v12 }
 0x16a   :  { %v300_v14 = vmax.f32 %v299_v13, 0.0 }
 0x16c   :  { %v301_v15 = vadd.f32 1e-05, %v300_v14 }
 0x16e   :  { %525 = vrsqrt.f32 %v301_v15  ;;  %vm308_vm5 = vweird.f32 %v301_v15 }
 0x174   :  { %v526_v16 = vpop.eup %525 }
 0x175   :  { %v303_v17 = vmul.f32 %v526_v16, %v301_v15  ;;  %vm309_vm4 = vweird.f32 %v526_v16 }
 0x176   :  { %vm310_vm6 = vmor %vm308_vm5, %vm309_vm4 }
 0x177   :  { %v304_v18 = vmul.f32 %v526_v16, %v303_v17 }
 0x179   :  { %v305_v19 = vmul.f32 0.5, %v304_v18 }
 0x17b   :  { %v306_v20 = vsub.f32 1.5, %v305_v19 }
 0x17d   :  { %v307_v22 = vmul.f32 %v526_v16, %v306_v20 }
 0x17f   :  { %v311_v23 = vsel %vm310_vm6, %v526_v16, %v307_v22 }
 0x180   :  { %v312_v24 = vmul.f32 %v311_v23, %v203_v21 }
 0x182   :  { %v313_v26 = vmul.f32 %v312_v24, %v289_v10  ;;  %v315_v27 = vperm.slane %v312_v24, 0 }
 0x184   :  { %v314_v28 = vsub.f32 %v204_v25, %v313_v26  ;;  %v316_v29 = vmul.f32 %v315_v27, %v279_v56 }
 0x186   :  { %v317_v30 = vperm.slane %v314_v28, 0 }
 0x188   :  { %v318_v31 = vadd.f32 %v317_v30, %v316_v29 }
 0x18a   :  { %v319_v32 = vmax.f32 %v318_v31, 0.0 }
 0x18c   :  { %v321_v33 = vpack.c.bf16 %v319_v32, %v319_v32 }
 0x18e   :  { %395 = vmatmul.bf16.vlgmr.msra.gmra.mxu2 %v321_v33 }
 0x211   :  { %v396_v35 = vpop.f32.mrf.mxu2 }
 0x212   :  { %v397_v36 = vadd.f32 %v522_v34, %v396_v35 }
 0x214   :  { %400 = vst [vmem:[#allocation14] sm:$0xff] %v397_v36 }
 0x215   :  { %411 = dma.vmem_to_hbm [thread:$0]  %s407_s6, 128, %s409_s12, [#allocation4]  }
 0x219   :  { %v398_v37 = vpop.f32.mrf.mxu2 }
 0x21a   :  { %727 = dma.done.wait [#allocation4], 128  }
 0x21b   :  { %728 = vsyncadd [#allocation4], 4294967168 }
 0x21c   :  { %416 = vsyncpa [#allocation3], 1 }
 0x21d   :  { %417 = vsyncpa [#allocation6], 1 }
 0x21e   :  { %418 = vsyncpa [#allocation9], 1 }
 0x21f   :  { %419 = vsyncpa [#allocation12], 1 }
 0x220   :  { %420 = vsyncpa [#allocation4], 1 }

</bundles_post_ra>
